<compile_context>
chip_gen: v7x
topology: tpu7x:2x2x1
jax: 0.10.0
libtpu: 0.0.40
codegen_flags: <defaults>
</compile_context>

<pallas_src>
import functools
import numpy as np
import jax
import jax.numpy as jnp
from jax.experimental import pallas as pl
from jax.experimental.pallas import tpu as pltpu

_EPS = 2.3e-08   # matches the PyTorch module's 2.3e-08


# ----------------------------- Pallas kernel --------------------------------

def _adain_kernel(x_ref, y_ref, o_ref, *, sx, sy):
    # x_ref: (R, Sx_pad) content rows, y_ref: (R, Sy_pad) style rows,
    # o_ref: (R, Sx_pad).  Each row is one (n, c) instance; sx/sy are the TRUE
    # (unpadded) spatial sizes.  Padded lanes hold zeros, so row sums are
    # already exact; only the centred squares need masking.
    inv_sx = 1.0 / float(sx)
    inv_sy = 1.0 / float(sy)

    # ---- style statistics (y); dy is consumed immediately, not kept live ----
    y = y_ref[...].astype(jnp.float32)
    mu_y = jnp.sum(y, axis=-1, keepdims=True) * inv_sy
    dy = y - mu_y
    if y.shape[-1] != sy:
        lane = jax.lax.broadcasted_iota(jnp.int32, y.shape, y.ndim - 1)
        dy = jnp.where(lane < sy, dy, 0.0)
    var_y = (jnp.sum(dy * dy, axis=-1, keepdims=True) + _EPS) * inv_sy
    sigma_y = jnp.sqrt(var_y)

    # ---- content statistics (x) + normalization -----------------------------
    x = x_ref[...].astype(jnp.float32)
    mu_x = jnp.sum(x, axis=-1, keepdims=True) * inv_sx
    dx = x - mu_x                              # needed for the output anyway
    if x.shape[-1] != sx:
        lane = jax.lax.broadcasted_iota(jnp.int32, x.shape, x.ndim - 1)
        dxm = jnp.where(lane < sx, dx, 0.0)
    else:
        dxm = dx
    var_x = (jnp.sum(dxm * dxm, axis=-1, keepdims=True) + _EPS) * inv_sx

    # sigma(y) / sigma(x) == sqrt(var_y) * rsqrt(var_x)   (EUP, no f32 divide)
    scale = sigma_y * jax.lax.rsqrt(var_x)
    o_ref[...] = (dx * scale + mu_y).astype(o_ref.dtype)


# ----------------------------- tiling helpers --------------------------------

def _round_up(v, m):
    return -(-v // m) * m


def _sublane_multiple(dtype):
    """Minimum sublane tile for the dtype: 8 (f32), 16 (bf16/f16), 32 (8-bit)."""
    return {4: 8, 2: 16, 1: 32}.get(jnp.dtype(dtype).itemsize, 8)


def _vmem_budget():
    """Generation-aware (budget_bytes, vmem_limit_bytes)."""
    cap = None
    try:
        info = pltpu.get_tpu_info()
        cap = int(getattr(info, "vmem_capacity_bytes", 0)) or None
    except Exception:
        cap = None
    if cap is None:
        limit = 32 << 20          # safe fallback on every generation
    elif cap <= (64 << 20):
        limit = 44 << 20          # v7x: only 64 MiB VMEM per TensorCore
    else:
        limit = 64 << 20          # v5e/v6e: 128 MiB physical; raise scoped limit
    budget = limit * 3 // 4       # headroom for double-buffers / compiler slack
    return budget, limit


def _pick_row_block(nc, bytes_per_row, sublane, budget):
    """Largest row block (multiple of the dtype's sublane tile) that fits the
    VMEM budget while keeping the grid deep enough (>= 4 steps, even count)
    for software pipelining and a balanced v7x two-TensorCore split."""
    if nc <= sublane:
        return nc                                   # full-extent block
    nc_rounded = _round_up(nc, sublane)
    r_budget = (budget // max(bytes_per_row, 1)) // sublane * sublane
    r_budget = max(sublane, min(r_budget, nc_rounded))

    steps = pl.cdiv(nc, r_budget)
    if steps < 4:
        steps = 4                                   # keep DMA/compute overlapped
    if steps > 1 and steps % 2:
        steps += 1                                  # even step count for v7x
    r = min(r_budget, _round_up(pl.cdiv(nc, steps), sublane))
    return max(r, sublane)


# ----------------------------- wrapper ---------------------------------------

def adain(x, y):
    """x: (N, C, Hx, Wx) content; y: (N, C, Hy, Wy) style (spatial sizes may
    differ).  Returns a tensor of x's shape, matching AdaIN.forward."""
    n, c, hx, wx = x.shape
    ny, cy, hy, wy = y.shape
    assert (n, c) == (ny, cy), "content and style must share (N, C)"
    nc, sx, sy = n * c, hx * wx, hy * wy

    xr = x.reshape(nc, sx)             # free reshape, stays row-major
    yr = y.reshape(nc, sy)

    # Lane-dense spatial axes: zero-pad to a multiple of 128 so input DMAs and
    # the output store are unmasked full-lane transfers; the kernel masks the
    # padded lanes out of the reductions and divides by the true H*W.
    sx_pad = _round_up(sx, 128)
    sy_pad = _round_up(sy, 128)
    if sx_pad != sx:
        xr = jnp.pad(xr, ((0, 0), (0, sx_pad - sx)))
    if sy_pad != sy:
        yr = jnp.pad(yr, ((0, 0), (0, sy_pad - sy)))

    x_bytes = jnp.dtype(x.dtype).itemsize
    y_bytes = jnp.dtype(y.dtype).itemsize
    sublane = max(_sublane_multiple(x.dtype), _sublane_multiple(y.dtype))
    budget, vmem_limit = _vmem_budget()

    # Per-row VMEM footprint: double-buffered pipelined tiles (input dtypes)
    # plus the in-kernel f32 upcasts / centred full-tile temporaries.
    bytes_per_row = (x_bytes * 2 * 2 * sx_pad       # x + out tiles, x2 buffers
                     + y_bytes * 2 * sy_pad         # y tile, x2 buffers
                     + 4 * (2 * sx_pad + 2 * sy_pad))  # f32 x/dx, y/dy temps
    r = _pick_row_block(nc, bytes_per_row, sublane, budget)
    grid = pl.cdiv(nc, r)              # ragged tail blocks are masked by Pallas
    # TODO(synk): for very large H*W where even r == sublane exceeds the VMEM
    # budget, fall back to a spatially tiled two-pass (stats, then normalize)
    # kernel instead of this single row-resident pass.

    kernel = functools.partial(_adain_kernel, sx=sx, sy=sy)
    out = pl.pallas_call(
        kernel,
        out_shape=jax.ShapeDtypeStruct((nc, sx_pad), x.dtype),
        grid_spec=pltpu.PrefetchScalarGridSpec(
            num_scalar_prefetch=0,
            grid=(grid,),
            in_specs=[
                pl.BlockSpec((r, sx_pad), lambda i: (i, 0)),
                pl.BlockSpec((r, sy_pad), lambda i: (i, 0)),
            ],
            out_specs=pl.BlockSpec((r, sx_pad), lambda i: (i, 0)),
        ),
        compiler_params=pltpu.CompilerParams(
            dimension_semantics=("parallel",),
            vmem_limit_bytes=vmem_limit),
        cost_estimate=pl.CostEstimate(
            flops=nc * (5 * sx + 3 * sy),
            transcendentals=2 * nc,
            bytes_accessed=nc * (2 * sx * x_bytes + sy * y_bytes)),
    )(xr, yr)

    if sx_pad != sx:
        out = out[:, :sx]
    return out.reshape(n, c, hx, wx)


# ----------------------------- main -------------------------------------------

if __name__ == "__main__":
    key = jax.random.PRNGKey(0)
    kx, ky = jax.random.split(key)
    # content embedding and a differently-sized style embedding (N, C match)
    x = jax.random.normal(kx, (2, 4, 16, 16), jnp.float32) * 1.7 + 0.3
    y = jax.random.normal(ky, (2, 4, 8, 8), jnp.float32) * 0.5 - 1.2

    fwd = jax.jit(adain)
    out = fwd(x, y)
    jax.block_until_ready(out)

    # pure-JAX reference mirroring the PyTorch module exactly
    def _mu(t):
        return jnp.sum(t, axis=(2, 3)) / (t.shape[2] * t.shape[3])

    def _sigma(t):
        d = jnp.transpose(jnp.transpose(t, (2, 3, 0, 1)) - _mu(t), (2, 3, 0, 1))
        return jnp.sqrt((jnp.sum(d ** 2, axis=(2, 3)) + _EPS)
                        / (t.shape[2] * t.shape[3]))

    def _ref(xc, ys):
        o = (_sigma(ys) * ((jnp.transpose(xc, (2, 3, 0, 1)) - _mu(xc))
                           / _sigma(xc)) + _mu(ys))
        return jnp.transpose(o, (2, 3, 0, 1))

    ref = jax.jit(_ref)(x, y)
    jax.block_until_ready(ref)

    assert out.shape == x.shape
    np.testing.assert_allclose(np.asarray(out), np.asarray(ref),
                               rtol=1e-4, atol=1e-4)
    print("KERNEL_OK")
</pallas_src>

<mosaic_0001>
module attributes {stable_mosaic.version = 11 : i64} {
  func.func @_adain_kernel(%arg0: i32, %arg1: memref<8x256xf32, #tpu.memory_space<vmem>>, %arg2: memref<8x128xf32, #tpu.memory_space<vmem>>, %arg3: memref<8x256xf32, #tpu.memory_space<vmem>>) attributes {dimension_semantics = [#tpu.dimension_semantics<parallel>], iteration_bounds = array<i64: 1>, scalar_prefetch = 0 : i64, scratch_operands = 0 : i64, tpu.core_type = #tpu.core_type<tc>, window_params = [{transform_indices = @transform_0, window_bounds = array<i64: 8, 256>}, {transform_indices = @transform_1, window_bounds = array<i64: 8, 128>}, {transform_indices = @transform_2, window_bounds = array<i64: 8, 256>}]} {
    %c0 = arith.constant 0 : index
    %c0_0 = arith.constant 0 : index
    %0 = vector.load %arg2[%c0, %c0_0] : memref<8x128xf32, #tpu.memory_space<vmem>>, vector<8x128xf32>
    %cst = arith.constant dense<0.000000e+00> : vector<8xf32>
    %1 = vector.multi_reduction <add>, %0, %cst [1] : vector<8x128xf32> to vector<8xf32>
    %2 = vector.shape_cast %1 : vector<8xf32> to vector<8x1xf32>
    %cst_1 = arith.constant 1.562500e-02 : f32
    %3 = vector.broadcast %cst_1 : f32 to vector<8x1xf32>
    %4 = arith.mulf %2, %3 : vector<8x1xf32>
    %5 = vector.broadcast %4 : vector<8x1xf32> to vector<8x128xf32>
    %6 = arith.subf %0, %5 : vector<8x128xf32>
    %7 = tpu.iota {dimensions = array<i32: 1>} : vector<8x128xi32>
    %c64_i32 = arith.constant 64 : i32
    %8 = vector.broadcast %c64_i32 : i32 to vector<8x128xi32>
    %9 = arith.cmpi slt, %7, %8 : vector<8x128xi32>
    %cst_2 = arith.constant 0.000000e+00 : f32
    %10 = vector.broadcast %cst_2 : f32 to vector<8x128xf32>
    %11 = arith.select %9, %6, %10 : vector<8x128xi1>, vector<8x128xf32>
    %12 = arith.mulf %11, %11 : vector<8x128xf32>
    %cst_3 = arith.constant dense<0.000000e+00> : vector<8xf32>
    %13 = vector.multi_reduction <add>, %12, %cst_3 [1] : vector<8x128xf32> to vector<8xf32>
    %14 = vector.shape_cast %13 : vector<8xf32> to vector<8x1xf32>
    %cst_4 = arith.constant 2.300000e-08 : f32
    %15 = vector.broadcast %cst_4 : f32 to vector<8x1xf32>
    %16 = arith.addf %14, %15 : vector<8x1xf32>
    %cst_5 = arith.constant 1.562500e-02 : f32
    %17 = vector.broadcast %cst_5 : f32 to vector<8x1xf32>
    %18 = arith.mulf %16, %17 : vector<8x1xf32>
    %19 = math.sqrt %18 : vector<8x1xf32>
    %c0_6 = arith.constant 0 : index
    %c0_7 = arith.constant 0 : index
    %20 = vector.load %arg1[%c0_6, %c0_7] : memref<8x256xf32, #tpu.memory_space<vmem>>, vector<8x256xf32>
    %cst_8 = arith.constant dense<0.000000e+00> : vector<8xf32>
    %21 = vector.multi_reduction <add>, %20, %cst_8 [1] : vector<8x256xf32> to vector<8xf32>
    %22 = vector.shape_cast %21 : vector<8xf32> to vector<8x1xf32>
    %cst_9 = arith.constant 3.906250e-03 : f32
    %23 = vector.broadcast %cst_9 : f32 to vector<8x1xf32>
    %24 = arith.mulf %22, %23 : vector<8x1xf32>
    %25 = vector.broadcast %24 : vector<8x1xf32> to vector<8x256xf32>
    %26 = arith.subf %20, %25 : vector<8x256xf32>
    %27 = arith.mulf %26, %26 : vector<8x256xf32>
    %cst_10 = arith.constant dense<0.000000e+00> : vector<8xf32>
    %28 = vector.multi_reduction <add>, %27, %cst_10 [1] : vector<8x256xf32> to vector<8xf32>
    %29 = vector.shape_cast %28 : vector<8xf32> to vector<8x1xf32>
    %cst_11 = arith.constant 2.300000e-08 : f32
    %30 = vector.broadcast %cst_11 : f32 to vector<8x1xf32>
    %31 = arith.addf %29, %30 : vector<8x1xf32>
    %cst_12 = arith.constant 3.906250e-03 : f32
    %32 = vector.broadcast %cst_12 : f32 to vector<8x1xf32>
    %33 = arith.mulf %31, %32 : vector<8x1xf32>
    %34 = math.rsqrt %33 : vector<8x1xf32>
    %35 = arith.mulf %19, %34 : vector<8x1xf32>
    %36 = vector.broadcast %35 : vector<8x1xf32> to vector<8x256xf32>
    %37 = arith.mulf %26, %36 : vector<8x256xf32>
    %38 = vector.broadcast %4 : vector<8x1xf32> to vector<8x256xf32>
    %39 = arith.addf %37, %38 : vector<8x256xf32>
    %c0_13 = arith.constant 0 : index
    %c0_14 = arith.constant 0 : index
    %40 = vector.load %arg3[%c0_13, %c0_14] : memref<8x256xf32, #tpu.memory_space<vmem>>, vector<8x256xf32>
    tpu.vector_store %arg3[%c0_13, %c0_14], %39 {strides = array<i32>} : memref<8x256xf32, #tpu.memory_space<vmem>>, vector<8x256xf32>,
    return
  }
  func.func @transform_0(%arg0: i32) -> (i32, i32) {
    %c0_i32 = arith.constant 0 : i32
    %c0_i32_0 = arith.constant 0 : i32
    return %arg0, %c0_i32 : i32, i32
  }
  func.func @transform_1(%arg0: i32) -> (i32, i32) {
    %c0_i32 = arith.constant 0 : i32
    %c0_i32_0 = arith.constant 0 : i32
    return %arg0, %c0_i32 : i32, i32
  }
  func.func @transform_2(%arg0: i32) -> (i32, i32) {
    %c0_i32 = arith.constant 0 : i32
    %c0_i32_0 = arith.constant 0 : i32
    return %arg0, %c0_i32 : i32, i32
  }
}

</mosaic_0001>

<bundles_post_ra>
// kernel: adain.1
= control target key start
LH: loop header
LB: loop body
LE: loop exit
PB: predicated region body
PF: predicated region fallthrough
CT: control target
= control target key end

     0   :  { %v16_v4 = vlaneseq  ;;  %s93_s1 = inlined_call_operand.vmem [shape: f32[8,128], index: 1, kind: input, shape index: {}]   ;;  %s94_s0 = inlined_call_operand.vmem [shape: f32[8,256], index: 0, kind: input, shape index: {}]   ;;  %s95_s2 = inlined_call_operand.vmem [shape: f32[8,256], index: 2, kind: output, shape index: {}]  }
   0x1   :  { %v11_v0 = vld [vmem:[%s93_s1] sm:$0xff]  ;;  %v33_v2 = vld [vmem:[%s94_s0 + $0x8] sm:$0xff] }
   0x2   :  { %v32_v1 = vld [vmem:[%s94_s0] sm:$0xff]  ;;  %12 = vadd.xlane.f32.xlu0 %v11_v0  ;;  %v17_v5 = vand.u32 127, %v16_v4 }
   0x3   :  { %v34_v3 = vadd.f32 %v33_v2, %v32_v1 }
   0x4   :  { %vm18_vm0 = vcmp.lt.s32.totalorder %v17_v5, 64 }
   0x6   :  { %35 = vadd.xlane.f32.xlu0 %v34_v3 }
  0x8f   :  { %v13_v6 = vpop.xlane.xlu0 %12 }
  0x90   :  { %v14_v7 = vmul.f32 0.015625, %v13_v6 }
  0x92   :  { %v15_v8 = vsub.f32 %v11_v0, %v14_v7 }
  0x93   :  { %v36_v9 = vpop.xlane.xlu0 %35 }
  0x94   :  { %v37_v10 = vmul.f32 0.00390625, %v36_v9  ;;  %v19_v11 = vsel %vm18_vm0, %v15_v8, 0.0 }
  0x95   :  { %v20_v12 = vmul.f32 %v19_v11, %v19_v11 }
  0x96   :  { %v38_v13 = vsub.f32 %v32_v1, %v37_v10  ;;  %v39_v14 = vsub.f32 %v33_v2, %v37_v10 }
  0x97   :  { %21 = vadd.xlane.f32.xlu1 %v20_v12 }
  0x98   :  { %v40_v15 = vmul.f32 %v38_v13, %v38_v13  ;;  %v41_v16 = vmul.f32 %v39_v14, %v39_v14 }
  0x9a   :  { %v42_v17 = vadd.f32 %v41_v16, %v40_v15 }
  0x9c   :  { %43 = vadd.xlane.f32.xlu1 %v42_v17 }
 0x124   :  { %v22_v18 = vpop.xlane.xlu1 %21 }
 0x125   :  { %v23_v19 = vadd.f32 2.3e-08, %v22_v18 }
 0x127   :  { %v24_v20 = vmul.f32 0.015625, %v23_v19 }
 0x129   :  { %59 = vrsqrt.f32 %v24_v20  ;;  %v44_v21 = vpop.xlane.xlu1 %43  ;;  %vm27_vm1 = vcmp.eq.f32.partialorder %v24_v20, inf  ;;  %v30_v26 = vand.u32 2147483648, %v24_v20  ;;  %vm29_vm2 = vcmp.eq.f32.partialorder %v24_v20, 0.0 }
 0x12a   :  { %v45_v22 = vadd.f32 2.3e-08, %v44_v21 }
 0x12c   :  { %v46_v23 = vmul.f32 0.00390625, %v45_v22 }
 0x12e   :  { %61 = vrsqrt.f32 %v46_v23 }
 0x133   :  { %v60_v24 = vpop.eup %59 }
 0x134   :  { %v26_v25 = vmul.f32 %v60_v24, %v24_v20 }
 0x136   :  { %v28_v27 = vsel %vm27_vm1, %v24_v20, %v26_v25 }
 0x137   :  { %v31_v28 = vsel %vm29_vm2, %v30_v26, %v28_v27 }
 0x138   :  { %v62_v29 = vpop.eup %61 }
 0x139   :  { %v48_v30 = vmul.f32 %v62_v29, %v31_v28 }
 0x13b   :  { %v49_v31 = vmul.f32 %v48_v30, %v38_v13  ;;  %v50_v32 = vmul.f32 %v48_v30, %v39_v14 }
 0x13d   :  { %v51_v33 = vadd.f32 %v49_v31, %v14_v7  ;;  %v52_v34 = vadd.f32 %v50_v32, %v14_v7 }
 0x13f   :  { %53 = vst [vmem:[%s95_s2] sm:$0xff] %v51_v33  ;;  %54 = vst [vmem:[%s95_s2 + $0x8] sm:$0xff] %v52_v34 }

</bundles_post_ra>
